<compile_context>
chip_gen: v5e
topology: v5e:2x2
jax: 0.10.0
libtpu: 0.0.40
codegen_flags: <defaults>
</compile_context>

<pallas_src>
import numpy as np
import jax
import jax.numpy as jnp
from jax.experimental import pallas as pl
from jax.experimental.pallas import tpu as pltpu


# --------------------------------------------------------------------------- #
# Kernels
# --------------------------------------------------------------------------- #
def _weight_combine_kernel(wex_ref, wix_ref, wei_ref, o_ref):
    """One-shot E/I combine: W_eff^T = Wex^T - Wix^T @ Wei^T (grid=(1,))."""
    w_eff_t = wex_ref[...] - jnp.dot(
        wix_ref[...], wei_ref[...], preferred_element_type=jnp.float32
    )
    o_ref[...] = w_eff_t.astype(o_ref.dtype)


def _make_conv_kernel(K, Cin, Wp, th, Hp_pad, slab_rows, prefetch_rows):
    """Conv-as-K*K-shifted-matmuls over a halo'd input slab.

    Grid = (N, num_row_blocks).  Per step:
      x_hbm : (N*Hp_pad*Wp + K-1, Cin)    flat padded NHWC input, raw HBM ref
      w_ref : (K*K*Cin, Co_pad)           effective weight, resident in VMEM
      o_ref : (th*Wp, Co_pad)             f32 output block (auto-pipelined)
      xbuf  : (nbuf, slab_rows, Cin)      VMEM slab(s): th+K-1 rows + halo
      sem   : (nbuf,) DMA semaphores

    Output row r = h_local*Wp + w maps to output pixel (h=i*th+h_local, w);
    columns w >= Wo (width padding) are garbage and sliced off in the wrapper.

    If prefetch_rows: the row-block grid axis must be sequential per core
    ("arbitrary"); step (n, i) prefetches the slab for (n, i+1) into the other
    buffer slot, and only i == 0 pays a synchronous fetch.
    """
    rows = th * Wp

    def kernel(x_hbm, w_ref, o_ref, xbuf, sem):
        n = pl.program_id(0)
        i = pl.program_id(1)
        grid_h = pl.num_programs(1)

        def slab_copy(row_block, slot):
            start = pl.multiple_of((n * Hp_pad + row_block * th) * Wp, 8)
            return pltpu.make_async_copy(
                x_hbm.at[pl.ds(start, slab_rows), :], xbuf.at[slot], sem.at[slot]
            )

        if prefetch_rows:
            slot = i % 2

            @pl.when(i == 0)
            def _():
                # First row block of this image: nobody prefetched it.
                slab_copy(0, 0).start()

            @pl.when(i + 1 < grid_h)
            def _():
                # Hide the next row block's input DMA behind this step's matmuls.
                slab_copy(i + 1, 1 - slot).start()

            slab_copy(i, slot).wait()
        else:
            slot = 0
            cp = slab_copy(i, 0)
            cp.start()
            cp.wait()

        xslab = xbuf.at[slot]
        acc = None
        for kh in range(K):
            for kw in range(K):
                # lhs row r = h*Wp + w reads input row (h+kh)*Wp + (w+kw):
                # exactly the (kh, kw) tap of the convolution.
                lhs = xslab[pl.ds(kh * Wp + kw, rows), :]
                rhs = w_ref[pl.ds((kh * K + kw) * Cin, Cin), :]
                contrib = jnp.dot(lhs, rhs, preferred_element_type=jnp.float32)
                acc = contrib if acc is None else acc + contrib
        o_ref[...] = acc.astype(o_ref.dtype)

    return kernel


# --------------------------------------------------------------------------- #
# Wrapper
# --------------------------------------------------------------------------- #
def ei_conv_forward(x_nchw, Wex, Wix, Wei, *, padding=1, stride=1,
                    compute_dtype=jnp.bfloat16, target_rows=1024):
    """EiConvLayer.forward (bias=False, homeostasis off).  x_nchw: (N,Cin,H,W)."""
    assert stride == 1, "reference module is used with stride=1"
    N, Cin, H, W = x_nchw.shape
    Co, Cin_w, K, K2 = Wex.shape
    Ci = Wix.shape[0]
    assert Cin_w == Cin and K == K2
    assert Wix.shape[1:] == (Cin, K, K), "forward assumes e/i kernel sizes match"
    assert Wei.shape == (Co, Ci)

    Ho = H + 2 * padding - K + 1
    Wo = W + 2 * padding - K + 1
    kk = K * K * Cin

    # ---- tiling ------------------------------------------------------------
    LANES = 128
    Co_pad = ((Co + LANES - 1) // LANES) * LANES          # lane-dense output
    Wp = ((W + 2 * padding + 7) // 8) * 8                 # 8-aligned padded width
    cbytes = int(jnp.dtype(compute_dtype).itemsize)

    def _tile_bytes(r, c, itemsize):
        # (8,128)-tile-padded VMEM footprint of an (r, c) array.
        return (-(-r // 8) * 8) * (-(-c // 128) * 128) * itemsize

    def _vmem_need(th_):
        slab = (th_ + K - 1) * Wp + (K - 1)
        return (2 * _tile_bytes(slab, Cin, cbytes)        # double-buffered slab
                + 3 * _tile_bytes(th_ * Wp, Co_pad, 4)    # out block (x2) + acc
                + 2 * _tile_bytes(kk, Co_pad, cbytes))    # resident weight

    th = max(1, min(Ho, target_rows // Wp))               # output rows per block
    VMEM_BUDGET = 24 * 2 ** 20                            # fits v7x's 64 MiB VMEM
    while th > 1 and _vmem_need(th) > VMEM_BUDGET:
        th = max(1, th // 2)

    # Batch axis is the megacore-parallel axis; cross-step slab prefetch needs
    # the row-block axis to run sequentially per core, so only enable it when
    # the batch axis alone can feed both v7x TensorCores.
    prefetch_rows = N >= 2
    if not prefetch_rows:
        # Single image: split rows into >= 2 parallel blocks so megacore works.
        while -(-Ho // th) < 2 and th > 1:
            th = (th + 1) // 2

    grid_h = -(-Ho // th)                                 # cdiv
    Ho_pad = grid_h * th
    Hp_pad = Ho_pad + K - 1
    slab_rows = (th + K - 1) * Wp + (K - 1)
    rows_blk = th * Wp
    nbuf = 2 if prefetch_rows else 1

    # ---- glue: NCHW -> zero-padded NHWC -> flat (rows, Cin), compute dtype --
    x_nhwc = jnp.transpose(x_nchw, (0, 2, 3, 1))
    xpad = jnp.pad(
        x_nhwc,
        ((0, 0),
         (padding, Hp_pad - H - padding),
         (padding, Wp - W - padding),
         (0, 0)),
    )
    x_flat = xpad.reshape(N * Hp_pad * Wp, Cin)
    x_flat = jnp.pad(x_flat, ((0, K - 1), (0, 0))).astype(compute_dtype)

    # ---- glue: flatten weights (column order p = (kh*K + kw)*Cin + ci) ------
    wex_f = jnp.transpose(Wex, (2, 3, 1, 0)).reshape(kk, Co)
    wix_f = jnp.transpose(Wix, (2, 3, 1, 0)).reshape(kk, Ci).astype(jnp.float32)
    wei_t = jnp.transpose(Wei)                              # (Ci, Co)
    wex_f = jnp.pad(wex_f, ((0, 0), (0, Co_pad - Co))).astype(jnp.float32)
    wei_t = jnp.pad(wei_t, ((0, 0), (0, Co_pad - Co))).astype(jnp.float32)

    # ---- one-shot Pallas kernel: hoisted W_eff combine ----------------------
    w_eff_t = pl.pallas_call(
        _weight_combine_kernel,
        out_shape=jax.ShapeDtypeStruct((kk, Co_pad), compute_dtype),
        grid=(1,),
        in_specs=[
            pl.BlockSpec((kk, Co_pad), lambda i: (0, 0)),
            pl.BlockSpec((kk, Ci), lambda i: (0, 0)),
            pl.BlockSpec((Ci, Co_pad), lambda i: (0, 0)),
        ],
        out_specs=pl.BlockSpec((kk, Co_pad), lambda i: (0, 0)),
    )(wex_f, wix_f, wei_t)

    # ---- main conv kernel ----------------------------------------------------
    kernel = _make_conv_kernel(K, Cin, Wp, th, Hp_pad, slab_rows, prefetch_rows)
    grid = (N, grid_h)
    dim_sem = ("parallel", "arbitrary") if prefetch_rows else ("parallel", "parallel")

    flops = 2 * N * Ho_pad * Wp * kk * Co_pad
    bytes_accessed = int(x_flat.size * cbytes + kk * Co_pad * cbytes
                         + N * Ho_pad * Wp * Co_pad * 4)
    vmem_limit = int(min(max(2 * _vmem_need(th), 16 * 2 ** 20), 48 * 2 ** 20))

    out_flat = pl.pallas_call(
        kernel,
        out_shape=jax.ShapeDtypeStruct((N * Ho_pad * Wp, Co_pad), jnp.float32),
        grid_spec=pltpu.PrefetchScalarGridSpec(
            num_scalar_prefetch=0,
            grid=grid,
            in_specs=[
                pl.BlockSpec(memory_space=pl.ANY),                 # raw HBM input
                pl.BlockSpec((kk, Co_pad), lambda n, i: (0, 0)),   # W_eff^T resident
            ],
            out_specs=pl.BlockSpec(
                (rows_blk, Co_pad), lambda n, i: (n * grid_h + i, 0)
            ),
            scratch_shapes=[
                pltpu.VMEM((nbuf, slab_rows, Cin), compute_dtype),
                pltpu.SemaphoreType.DMA((nbuf,)),
            ],
        ),
        compiler_params=pltpu.CompilerParams(
            dimension_semantics=dim_sem,
            vmem_limit_bytes=vmem_limit,
        ),
        cost_estimate=pl.CostEstimate(
            flops=flops, transcendentals=0, bytes_accessed=bytes_accessed
        ),
    )(x_flat, w_eff_t)

    out = out_flat.reshape(N, Ho_pad, Wp, Co_pad)[:, :Ho, :Wo, :Co]
    return jnp.transpose(out, (0, 3, 1, 2)).astype(x_nchw.dtype)   # back to NCHW


# --------------------------------------------------------------------------- #
# Deterministic EiConvInit_WexMean ('lognormal') initialization
# --------------------------------------------------------------------------- #
def init_ei_weights(in_channels, e_channels, i_channels, k, seed=0):
    rng = np.random.default_rng(seed)
    n_input = in_channels * k * k
    ne, ni = e_channels, i_channels
    target_std_wex = np.sqrt(2.0 * ne / (n_input * (ne - 1)))
    mean, var = target_std_wex, target_std_wex ** 2
    mu = np.log(mean ** 2 / np.sqrt(mean ** 2 + var))
    sigma = np.sqrt(np.log(1 + var / mean ** 2))
    Wex = rng.lognormal(mu, sigma, size=(ne, in_channels, k, k))
    Wei = rng.lognormal(mu, sigma, size=(ne, ni))
    Wei = Wei / Wei.sum(axis=1, keepdims=True)
    Wix = np.ones((ni, in_channels, k, k)) * Wex.mean(axis=0, keepdims=True)
    return (
        jnp.asarray(Wex, jnp.float32),
        jnp.asarray(Wix, jnp.float32),
        jnp.asarray(Wei, jnp.float32),
    )


if __name__ == "__main__":
    # Small shapes consistent with the module (NCHW input).
    N, Cin, H, W = 2, 4, 16, 16
    e_channels, i_channels, ksize = 8, 2, 3

    Wex, Wix, Wei = init_ei_weights(Cin, e_channels, i_channels, ksize, seed=0)
    assert bool(jnp.all(Wix >= 0))  # mirrors the assert in EiConvLayer.forward

    x = jax.random.normal(jax.random.PRNGKey(0), (N, Cin, H, W), dtype=jnp.float32)

    # Pure-JAX reference of the same forward pass (weight combine + conv2d).
    w_eff = (
        Wex.reshape(e_channels, -1) - Wei @ Wix.reshape(i_channels, -1)
    ).reshape(Wex.shape)
    ref = jax.lax.conv_general_dilated(
        x, w_eff, window_strides=(1, 1), padding=[(1, 1), (1, 1)],
        dimension_numbers=("NCHW", "OIHW", "NCHW"),
    )

    # f32 compute path (single row block per image): strict numerical check.
    out_f32 = jax.block_until_ready(
        ei_conv_forward(x, Wex, Wix, Wei, padding=1, stride=1,
                        compute_dtype=jnp.float32)
    )
    assert out_f32.shape == (N, e_channels, H, W)
    np.testing.assert_allclose(np.asarray(out_f32), np.asarray(ref),
                               rtol=1e-4, atol=1e-4)

    # f32 compute path with small row tiles: exercises grid_h > 1 and the
    # cross-step double-buffered slab prefetch; still a strict check.
    out_f32_tiled = jax.block_until_ready(
        ei_conv_forward(x, Wex, Wix, Wei, padding=1, stride=1,
                        compute_dtype=jnp.float32, target_rows=128)
    )
    np.testing.assert_allclose(np.asarray(out_f32_tiled), np.asarray(ref),
                               rtol=1e-4, atol=1e-4)

    # Default bf16-operand path (f32 accumulation): loose sanity check.
    out_bf16 = jax.block_until_ready(
        ei_conv_forward(x, Wex, Wix, Wei, padding=1, stride=1)
    )
    assert out_bf16.shape == (N, e_channels, H, W)
    np.testing.assert_allclose(np.asarray(out_bf16), np.asarray(ref),
                               rtol=5e-2, atol=1e-1)

    # TODO(synk): homeostasis local-loss gradient bookkeeping (training-time
    # side effect on Wei/Wix .grad) has no bearing on the forward output and is
    # not implemented here.
    print("KERNEL_OK")
</pallas_src>

<mosaic_0001>
module attributes {stable_mosaic.version = 11 : i64} {
  func.func @_weight_combine_kernel(%arg0: i32, %arg1: memref<36x128xf32, #tpu.memory_space<vmem>>, %arg2: memref<36x2xf32, #tpu.memory_space<vmem>>, %arg3: memref<2x128xf32, #tpu.memory_space<vmem>>, %arg4: memref<36x128xf32, #tpu.memory_space<vmem>>) attributes {dimension_semantics = [#tpu.dimension_semantics<arbitrary>], iteration_bounds = array<i64: 1>, scalar_prefetch = 0 : i64, scratch_operands = 0 : i64, tpu.core_type = #tpu.core_type<tc>, window_params = [{pipeline_mode = #tpu.pipeline_mode<synchronous>, transform_indices = @transform_0, window_bounds = array<i64: 36, 128>}, {pipeline_mode = #tpu.pipeline_mode<synchronous>, transform_indices = @transform_1, window_bounds = array<i64: 36, 2>}, {pipeline_mode = #tpu.pipeline_mode<synchronous>, transform_indices = @transform_2, window_bounds = array<i64: 2, 128>}, {pipeline_mode = #tpu.pipeline_mode<synchronous>, transform_indices = @transform_3, window_bounds = array<i64: 36, 128>}]} {
    %c0 = arith.constant 0 : index
    %c0_0 = arith.constant 0 : index
    %0 = vector.load %arg1[%c0, %c0_0] : memref<36x128xf32, #tpu.memory_space<vmem>>, vector<36x128xf32>
    %c0_1 = arith.constant 0 : index
    %c0_2 = arith.constant 0 : index
    %1 = vector.load %arg2[%c0_1, %c0_2] : memref<36x2xf32, #tpu.memory_space<vmem>>, vector<36x2xf32>
    %c0_3 = arith.constant 0 : index
    %c0_4 = arith.constant 0 : index
    %2 = vector.load %arg3[%c0_3, %c0_4] : memref<2x128xf32, #tpu.memory_space<vmem>>, vector<2x128xf32>
    %cst = arith.constant dense<0.000000e+00> : vector<36x128xf32>
    %3 = tpu.matmul %1, %2, %cst {dimension_numbers = #tpu.dot_dimension_numbers<[1], [0], [0], [1], [0, 0, 1, 1], [], []>} : vector<36x2xf32>, vector<2x128xf32>, vector<36x128xf32> -> vector<36x128xf32>
    %4 = arith.subf %0, %3 : vector<36x128xf32>
    %c0_5 = arith.constant 0 : index
    %c0_6 = arith.constant 0 : index
    %5 = vector.load %arg4[%c0_5, %c0_6] : memref<36x128xf32, #tpu.memory_space<vmem>>, vector<36x128xf32>
    tpu.vector_store %arg4[%c0_5, %c0_6], %4 {strides = array<i32>} : memref<36x128xf32, #tpu.memory_space<vmem>>, vector<36x128xf32>,
    return
  }
  func.func @transform_0(%arg0: i32) -> (i32, i32) {
    %c0_i32 = arith.constant 0 : i32
    %c0_i32_0 = arith.constant 0 : i32
    %c0_i32_1 = arith.constant 0 : i32
    return %c0_i32, %c0_i32_0 : i32, i32
  }
  func.func @transform_1(%arg0: i32) -> (i32, i32) {
    %c0_i32 = arith.constant 0 : i32
    %c0_i32_0 = arith.constant 0 : i32
    %c0_i32_1 = arith.constant 0 : i32
    return %c0_i32, %c0_i32_0 : i32, i32
  }
  func.func @transform_2(%arg0: i32) -> (i32, i32) {
    %c0_i32 = arith.constant 0 : i32
    %c0_i32_0 = arith.constant 0 : i32
    %c0_i32_1 = arith.constant 0 : i32
    return %c0_i32, %c0_i32_0 : i32, i32
  }
  func.func @transform_3(%arg0: i32) -> (i32, i32) {
    %c0_i32 = arith.constant 0 : i32
    %c0_i32_0 = arith.constant 0 : i32
    %c0_i32_1 = arith.constant 0 : i32
    return %c0_i32, %c0_i32_0 : i32, i32
  }
}

</mosaic_0001>

<bundles_post_ra>
// kernel: tpu_custom_call.1
= control target key start
LH: loop header
LB: loop body
LE: loop exit
PB: predicated region body
PF: predicated region fallthrough
CT: control target
= control target key end

     0   :  { %vm42_vm0 = vcmask 1041408   ;;  %vm26_vm1 = vcmask 15360   ;;  %s203_s0 = inlined_call_operand.vmem [shape: f32[36,128], index: 0, kind: input, shape index: {}]   ;;  %s204_s1 = inlined_call_operand.vmem [shape: f32[36,2], index: 1, kind: input, shape index: {}]   ;;  %s205_s2 = inlined_call_operand.vmem [shape: f32[2,128], index: 2, kind: input, shape index: {}]   ;;  %s206_s3 = inlined_call_operand.hbm [shape: f32[36,128], index: 3, kind: output, shape index: {}]  }
   0x1   :  { %v25_v0 = vld [vmem:[%s205_s2] sm:$0x3]  ;;  %v22_v1 = vld [vmem:[%s204_s1 + $0x10] sm:$0xff]  ;;  %v21_v4 = vld [vmem:[%s204_s1 + $0x8] sm:$0xff] }
   0x2   :  { %113 = vmatpush.msk.msra.mxu2 %vm42_vm0, %v25_v0  ;;  %114 = vmatpush.msk.msra.mxu3 %vm42_vm0, %v25_v0  ;;  %v24_v2 = vld [vmem:[%s204_s1 + $0x20] sm:$0xf] }
   0x3   :  { %v20_v3 = vld [vmem:[%s204_s1] sm:$0xff]  ;;  %109 = vmatmul.msk.f32.vlgmr.msra.gmra.mxu2 %vm26_vm1, %v22_v1  ;;  %111 = vmatmul.msk.f32.vlgmr.msra.gmra.mxu3 %vm26_vm1, %v24_v2 }
   0x4   :  { %8 = vsyncpa [#allocation3], 0  ;;  %106 = vmatpush.msk.msra.mxu0 %vm42_vm0, %v25_v0  ;;  %112 = vmatpush.msk.msra.mxu1 %vm42_vm0, %v25_v0  ;;  %v23_v5 = vld [vmem:[%s204_s1 + $0x18] sm:$0xff]  ;;  %v15_v6 = vld [vmem:[%s203_s0] sm:$0xff]  ;;  %s144_s1 = smov [#allocation2]   ;;  %s94_s7 = sshll.u32 %s206_s3, 4  ;;  %s95_s7 = int_to_ptr.hbm [resolvable:$true] %s94_s7 }
   0x5   :  { %107 = vmatmul.msk.f32.vlgmr.msra.gmra.mxu0 %vm26_vm1, %v20_v3  ;;  %108 = vmatmul.msk.f32.vlgmr.msra.gmra.mxu1 %vm26_vm1, %v21_v4  ;;  %v16_v7 = vld [vmem:[%s203_s0 + $0x8] sm:$0xff]  ;;  %v17_v12 = vld [vmem:[%s203_s0 + $0x10] sm:$0xff]  ;;  %v19_v13 = vld [vmem:[%s203_s0 + $0x20] sm:$0xf]  ;;  %s92_s4 = sshll.u32 %s144_s1, 4  ;;  %s145_s10 = smov 128   ;;  %s93_s4 = int_to_ptr.vmem [resolvable:$true] %s92_s4 }
   0x6   :  { %v18_v18 = vld [vmem:[%s203_s0 + $0x18] sm:$0xff]  ;;  %s146_s11 = smov 8  }
   0xb   :  { %110 = vmatmul.msk.f32.gmra.mxu2 %vm26_vm1, %v23_v5 }
  0x82   :  { %v63_v8 = vpop.f32.mrf.mxu0  ;;  %v66_v9 = vpop.f32.mrf.mxu1 }
  0x83   :  { %v78_v10 = vsub.f32 %v15_v6, %v63_v8  ;;  %v79_v11 = vsub.f32 %v16_v7, %v66_v9 }
  0x85   :  { %83 = vst [vmem:[#allocation2] sm:$0xff] %v78_v10 }
  0x86   :  { %v69_v14 = vpop.f32.mrf.mxu2  ;;  %84 = vst [vmem:[#allocation2 + $0x8] sm:$0xff] %v79_v11  ;;  %v75_v15 = vpop.f32.mrf.mxu3 }
  0x87   :  { %v80_v16 = vsub.f32 %v17_v12, %v69_v14  ;;  %v82_v17 = vsub.f32 %v19_v13, %v75_v15 }
  0x89   :  { %85 = vst [vmem:[#allocation2 + $0x10] sm:$0xff] %v80_v16 }
  0x8a   :  { %87 = vst [vmem:[#allocation2 + $0x20] sm:$0xf] %v82_v17 }
  0x8e   :  { %v72_v19 = vpop.f32.mrf.mxu2 }
  0x8f   :  { %v81_v20 = vsub.f32 %v18_v18, %v72_v19 }
  0x91   :  { %86 = vst [vmem:[#allocation2 + $0x18] sm:$0xff] %v81_v20 }
  0x92   :  { %100 = dma.vmem_to_hbm [thread:$0]  %s93_s4, 640, %s95_s7, [#allocation3], %s145_s10, %s145_s10, %s146_s11  }
  0x93   :  { %142 = dma.done.wait [#allocation3], 640  }
  0x94   :  { %143 = vsyncadd [#allocation3], 4294966656 }
  0x95   :  { %105 = vsyncpa [#allocation3], 1 }

</bundles_post_ra>
